<compile_context>
chip_gen: v6e
topology: v6e:2x2x1
jax: 0.10.0
libtpu: 0.0.40
codegen_flags: <defaults>
</compile_context>

<pallas_src>
import jax
import jax.numpy as jnp
from jax.experimental import pallas as pl
from jax.experimental.pallas import tpu as pltpu


def _round_up(x, m):
    return (x + m - 1) // m * m


def _vmem_budget_bytes():
    """~75% of physical VMEM: ~48 MiB on v7x, ~96 MiB on v5e/v6e."""
    try:
        phys = int(pltpu.get_tpu_info().vmem_capacity_bytes)
    except Exception:
        phys = 64 * 1024 * 1024  # conservative (v7x per-core) fallback
    return max((phys * 3) // 4, 32 * 1024 * 1024)


def _choose_tk(F, tb_cap, w_width, tk_max, vmem_limit):
    """Reduction-tile size: as large as the VMEM budget allows, then rounded to a
    divisor-friendly multiple of 128 so F padding is minimal."""
    reserve = 4 * 1024 * 1024           # bias / cavw / output / accumulator / misc
    budget = max(vmem_limit - reserve, 2 * 1024 * 1024)
    # Double-buffered bf16 x tile (tb_cap x tk) + weight tile (tk x w_width).
    bytes_per_tk = 2 * 2 * (tb_cap + w_width)
    tk_cap = max((budget // bytes_per_tk) // 128 * 128, 128)
    tk_target = max(128, min(_round_up(tk_max, 128), tk_cap, _round_up(F, 128)))
    n_k = -(-F // tk_target)            # number of reduction steps
    tk = _round_up(-(-F // n_k), 128)   # per-step tile, minimal padding
    F_pad = tk * n_k
    return tk, F_pad


# --------------------------------- kernels ---------------------------------- #

def _fused_margin_kernel(x_ref, w_ref, bias_ref, o_ref):
    # x_ref:    [tb, tk]  bf16 flattened-image tile
    # w_ref:    [tk, Kp]  bf16 fused weight tile (W_backbone @ cavs.T / norms)
    # bias_ref: [1,  Kp]  f32  intercepts / norms (VMEM-resident)
    # o_ref:    [tb, Kp]  f32  margins.T; its block index depends only on the
    #           batch axis so it stays VMEM-resident across the k axis and is
    #           used directly as the accumulator (no scratch, no epilogue copy).
    k = pl.program_id(1)

    @pl.when(k == 0)
    def _():
        o_ref[...] = jnp.zeros_like(o_ref) + bias_ref[...]

    o_ref[...] += jnp.dot(x_ref[...], w_ref[...],
                          preferred_element_type=jnp.float32)


def _two_stage_margin_kernel(x_ref, w_ref, cavw_ref, bias_ref, o_ref, emb_acc):
    # x_ref:    [tb, tk]  bf16
    # w_ref:    [tk, Dp]  bf16 backbone weight tile (the dominant HBM stream)
    # cavw_ref: [Dp, Kp]  f32  cavs.T / norms (tiny, VMEM-resident)
    # bias_ref: [1,  Kp]  f32
    # o_ref:    [tb, Kp]  f32
    # emb_acc:  [tb, Dp]  f32  embedding accumulator across the k axis
    k = pl.program_id(1)

    @pl.when(k == 0)
    def _():
        emb_acc[...] = jnp.zeros_like(emb_acc)

    emb_acc[...] += jnp.dot(x_ref[...], w_ref[...],
                            preferred_element_type=jnp.float32)

    @pl.when(k == pl.num_programs(1) - 1)
    def _():
        o_ref[...] = jnp.dot(emb_acc[...], cavw_ref[...],
                             preferred_element_type=jnp.float32) + bias_ref[...]


# ----------------------------- wrapper (API) -------------------------------- #

def prepare_saliency(w_backbone, cavs, intercepts, norms, *,
                     tk_max=8192, tb_cap=256):
    """One-time per-model precompute (hoisted out of the forward hot path)."""
    F, D = w_backbone.shape
    K = cavs.shape[0]
    Kp = _round_up(K, 128)
    Dp = _round_up(D, 128)

    cavs_f = cavs.astype(jnp.float32)
    norms_f = norms.astype(jnp.float32)
    icpt_f = intercepts.astype(jnp.float32)
    cavs_p = jnp.pad(cavs_f, ((0, Kp - K), (0, 0)))
    norms_p = jnp.pad(norms_f, (0, Kp - K), constant_values=1.0)  # avoid div-by-0
    icpt_p = jnp.pad(icpt_f, (0, Kp - K))

    bias = (icpt_p / norms_p).reshape(1, Kp)               # [1, Kp] f32
    cavw = cavs_p.T / norms_p[None, :]                     # [D, Kp] f32

    fused = D >= Kp        # fused weight only shrinks the dominant stream if D >= Kp
    w_width = Kp if fused else Dp
    vmem_limit = _vmem_budget_bytes()
    tk, F_pad = _choose_tk(F, tb_cap, w_width, tk_max, vmem_limit)

    if fused:
        # W_fused[f, k] = sum_d W_backbone[f, d] * cavs[k, d] / norms[k]
        w_stream = w_backbone.astype(jnp.float32) @ cavw    # [F, Kp]
        cavw_res = None
    else:
        w_stream = jnp.pad(w_backbone.astype(jnp.float32), ((0, 0), (0, Dp - D)))
        cavw_res = jnp.pad(cavw, ((0, Dp - D), (0, 0)))     # [Dp, Kp] f32 (resident)

    # Stream the dominant weight as bf16 (f32 accumulation happens on the MXU).
    w_stream = jnp.pad(w_stream, ((0, F_pad - F), (0, 0))).astype(jnp.bfloat16)

    # Materialise everything now so none of this runs per forward call.
    jax.block_until_ready([a for a in (w_stream, cavw_res, bias) if a is not None])

    return dict(mode="fused" if fused else "two_stage",
                w_stream=w_stream, cavw=cavw_res, bias=bias,
                F=F, F_pad=F_pad, tk=tk, K=K, Kp=Kp, Dp=Dp,
                tb_cap=tb_cap, vmem_limit=vmem_limit)


def saliency_forward(x_nchw, params):
    """margins.T = ((cavs @ encode(x).T + intercepts) / norms).T  -> [B, K]."""
    B = x_nchw.shape[0]
    F = x_nchw.shape[1] * x_nchw.shape[2] * x_nchw.shape[3]
    assert F == params["F"], "input spatial size does not match prepared weights"

    tk, F_pad, Kp, Dp = params["tk"], params["F_pad"], params["Kp"], params["Dp"]
    tb = min(_round_up(B, 8), params["tb_cap"])
    B_pad = _round_up(B, tb)

    # Cast to bf16 *before* padding (single HBM pass over x).
    x_bf = x_nchw.reshape(B, F).astype(jnp.bfloat16)
    x_p = jnp.pad(x_bf, ((0, B_pad - B), (0, F_pad - F)))

    grid = (B_pad // tb, F_pad // tk)
    compiler_params = pltpu.CompilerParams(
        dimension_semantics=("parallel", "arbitrary"),
        vmem_limit_bytes=int(params["vmem_limit"]))
    out_shape = jax.ShapeDtypeStruct((B_pad, Kp), jnp.float32)

    if params["mode"] == "fused":
        out_padded = pl.pallas_call(
            _fused_margin_kernel,
            out_shape=out_shape,
            grid_spec=pltpu.PrefetchScalarGridSpec(
                num_scalar_prefetch=0,
                grid=grid,
                in_specs=[
                    pl.BlockSpec((tb, tk), lambda i, k: (i, k)),   # x tile
                    pl.BlockSpec((tk, Kp), lambda i, k: (k, 0)),   # fused weight
                    pl.BlockSpec((1, Kp), lambda i, k: (0, 0)),    # bias (resident)
                ],
                out_specs=pl.BlockSpec((tb, Kp), lambda i, k: (i, 0)),
            ),
            compiler_params=compiler_params,
        )(x_p, params["w_stream"], params["bias"])
    else:
        out_padded = pl.pallas_call(
            _two_stage_margin_kernel,
            out_shape=out_shape,
            grid_spec=pltpu.PrefetchScalarGridSpec(
                num_scalar_prefetch=0,
                grid=grid,
                in_specs=[
                    pl.BlockSpec((tb, tk), lambda i, k: (i, k)),   # x tile
                    pl.BlockSpec((tk, Dp), lambda i, k: (k, 0)),   # backbone weight
                    pl.BlockSpec((Dp, Kp), lambda i, k: (0, 0)),   # cavs.T/norms
                    pl.BlockSpec((1, Kp), lambda i, k: (0, 0)),    # bias (resident)
                ],
                out_specs=pl.BlockSpec((tb, Kp), lambda i, k: (i, 0)),
                scratch_shapes=[pltpu.VMEM((tb, Dp), jnp.float32)],
            ),
            compiler_params=compiler_params,
        )(x_p, params["w_stream"], params["cavw"], params["bias"])

    # Keep the un-padding slice adjacent to the pallas_call: padded K columns /
    # batch rows must never be consumed.
    return out_padded[:B, :params["K"]]


if __name__ == "__main__":
    def run_case(name, B, C, H, W, D, K, tk_max):
        key = jax.random.PRNGKey(0)
        kx, kw, kc, ki, kn = jax.random.split(key, 5)
        x = jax.random.normal(kx, (B, C, H, W), dtype=jnp.float32)
        w_backbone = jax.random.normal(kw, (C * H * W, D), dtype=jnp.float32) * 0.02
        cavs = jax.random.normal(kc, (K, D), dtype=jnp.float32)
        intercepts = jax.random.normal(ki, (K,), dtype=jnp.float32)
        norms = jnp.abs(jax.random.normal(kn, (K,), dtype=jnp.float32)) + 1.0

        params = prepare_saliency(w_backbone, cavs, intercepts, norms, tk_max=tk_max)
        out = jax.block_until_ready(saliency_forward(x, params))

        # Pure-JAX f32 reference mirroring the PyTorch math exactly.
        emb = x.reshape(B, -1) @ w_backbone                      # encode_image stand-in
        margins = (cavs @ emb.T + intercepts[:, None]) / norms[:, None]
        ref = margins.T                                          # [B, K]

        assert out.shape == (B, K)
        rel = jnp.linalg.norm(out - ref) / (jnp.linalg.norm(ref) + 1e-6)
        assert rel < 2e-2, f"{name}: relative error {rel} (mode={params['mode']})"

    # Two-stage path (toy D=32 < 128): streams W_backbone, in-kernel f32 epilogue.
    # tk_max=384 forces a 3-step pipelined F reduction at this small F=1024.
    run_case("two_stage", B=2, C=4, H=16, W=16, D=32, K=8, tk_max=384)
    # Fused path (D=256 >= Kp=128): single fused-weight matmul, 2 F tiles,
    # accumulation directly into the resident f32 output block.
    run_case("fused", B=2, C=4, H=16, W=16, D=256, K=8, tk_max=512)

    print("KERNEL_OK")
</pallas_src>

<mosaic_0001>
module attributes {stable_mosaic.version = 11 : i64} {
  func.func @_two_stage_margin_kernel(%arg0: i32, %arg1: i32, %arg2: memref<8x384xbf16, #tpu.memory_space<vmem>>, %arg3: memref<384x128xbf16, #tpu.memory_space<vmem>>, %arg4: memref<128x128xf32, #tpu.memory_space<vmem>>, %arg5: memref<1x128xf32, #tpu.memory_space<vmem>>, %arg6: memref<8x128xf32, #tpu.memory_space<vmem>>, %arg7: memref<8x128xf32, #tpu.memory_space<vmem>>) attributes {dimension_semantics = [#tpu.dimension_semantics<parallel>, #tpu.dimension_semantics<arbitrary>], iteration_bounds = array<i64: 1, 3>, scalar_prefetch = 0 : i64, scratch_operands = 1 : i64, tpu.core_type = #tpu.core_type<tc>, window_params = [{transform_indices = @transform_0, window_bounds = array<i64: 8, 384>}, {transform_indices = @transform_1, window_bounds = array<i64: 384, 128>}, {pipeline_mode = #tpu.pipeline_mode<synchronous>, transform_indices = @transform_2, window_bounds = array<i64: 128, 128>}, {pipeline_mode = #tpu.pipeline_mode<synchronous>, transform_indices = @transform_3, window_bounds = array<i64: 1, 128>}, {transform_indices = @transform_4, window_bounds = array<i64: 8, 128>}]} {
    %c0_i32 = arith.constant 0 : i32
    %0 = arith.cmpi eq, %arg1, %c0_i32 : i32
    %1 = arith.extui %0 : i1 to i32
    %c0_i32_0 = arith.constant 0 : i32
    %2 = arith.cmpi ne, %1, %c0_i32_0 : i32
    scf.if %2 {
      %cst_9 = arith.constant 0.000000e+00 : f32
      %12 = vector.broadcast %cst_9 : f32 to vector<8x128xf32>
      %c0_10 = arith.constant 0 : index
      %c0_11 = arith.constant 0 : index
      %13 = vector.load %arg7[%c0_10, %c0_11] : memref<8x128xf32, #tpu.memory_space<vmem>>, vector<8x128xf32>
      tpu.vector_store %arg7[%c0_10, %c0_11], %12 {strides = array<i32>} : memref<8x128xf32, #tpu.memory_space<vmem>>, vector<8x128xf32>,
    } else {
    }
    %c0 = arith.constant 0 : index
    %c0_1 = arith.constant 0 : index
    %3 = vector.load %arg7[%c0, %c0_1] : memref<8x128xf32, #tpu.memory_space<vmem>>, vector<8x128xf32>
    %c0_2 = arith.constant 0 : index
    %c0_3 = arith.constant 0 : index
    %4 = vector.load %arg2[%c0_2, %c0_3] : memref<8x384xbf16, #tpu.memory_space<vmem>>, vector<8x384xbf16>
    %c0_4 = arith.constant 0 : index
    %c0_5 = arith.constant 0 : index
    %5 = vector.load %arg3[%c0_4, %c0_5] : memref<384x128xbf16, #tpu.memory_space<vmem>>, vector<384x128xbf16>
    %cst = arith.constant dense<0.000000e+00> : vector<8x128xf32>
    %6 = tpu.matmul %4, %5, %cst {dimension_numbers = #tpu.dot_dimension_numbers<[1], [0], [0], [1], [0, 0, 1, 1], [], []>} : vector<8x384xbf16>, vector<384x128xbf16>, vector<8x128xf32> -> vector<8x128xf32>
    %7 = arith.addf %3, %6 : vector<8x128xf32>
    %c0_6 = arith.constant 0 : index
    %c0_7 = arith.constant 0 : index
    %8 = vector.load %arg7[%c0_6, %c0_7] : memref<8x128xf32, #tpu.memory_space<vmem>>, vector<8x128xf32>
    tpu.vector_store %arg7[%c0_6, %c0_7], %7 {strides = array<i32>} : memref<8x128xf32, #tpu.memory_space<vmem>>, vector<8x128xf32>,
    %c2_i32 = arith.constant 2 : i32
    %9 = arith.cmpi eq, %arg1, %c2_i32 : i32
    %10 = arith.extui %9 : i1 to i32
    %c0_i32_8 = arith.constant 0 : i32
    %11 = arith.cmpi ne, %10, %c0_i32_8 : i32
    scf.if %11 {
      %c0_9 = arith.constant 0 : index
      %c0_10 = arith.constant 0 : index
      %12 = vector.load %arg7[%c0_9, %c0_10] : memref<8x128xf32, #tpu.memory_space<vmem>>, vector<8x128xf32>
      %c0_11 = arith.constant 0 : index
      %c0_12 = arith.constant 0 : index
      %13 = vector.load %arg4[%c0_11, %c0_12] : memref<128x128xf32, #tpu.memory_space<vmem>>, vector<128x128xf32>
      %cst_13 = arith.constant dense<0.000000e+00> : vector<8x128xf32>
      %14 = tpu.matmul %12, %13, %cst_13 {dimension_numbers = #tpu.dot_dimension_numbers<[1], [0], [0], [1], [0, 0, 1, 1], [], []>} : vector<8x128xf32>, vector<128x128xf32>, vector<8x128xf32> -> vector<8x128xf32>
      %c0_14 = arith.constant 0 : index
      %c0_15 = arith.constant 0 : index
      %15 = vector.load %arg5[%c0_14, %c0_15] : memref<1x128xf32, #tpu.memory_space<vmem>>, vector<1x128xf32>
      %16 = vector.broadcast %15 : vector<1x128xf32> to vector<8x128xf32>
      %17 = arith.addf %14, %16 : vector<8x128xf32>
      %c0_16 = arith.constant 0 : index
      %c0_17 = arith.constant 0 : index
      %18 = vector.load %arg6[%c0_16, %c0_17] : memref<8x128xf32, #tpu.memory_space<vmem>>, vector<8x128xf32>
      tpu.vector_store %arg6[%c0_16, %c0_17], %17 {strides = array<i32>} : memref<8x128xf32, #tpu.memory_space<vmem>>, vector<8x128xf32>,
    } else {
    }
    return
  }
  func.func @transform_0(%arg0: i32, %arg1: i32) -> (i32, i32) {
    %c0_i32 = arith.constant 0 : i32
    return %arg0, %arg1 : i32, i32
  }
  func.func @transform_1(%arg0: i32, %arg1: i32) -> (i32, i32) {
    %c0_i32 = arith.constant 0 : i32
    %c0_i32_0 = arith.constant 0 : i32
    return %arg1, %c0_i32 : i32, i32
  }
  func.func @transform_2(%arg0: i32, %arg1: i32) -> (i32, i32) {
    %c0_i32 = arith.constant 0 : i32
    %c0_i32_0 = arith.constant 0 : i32
    %c0_i32_1 = arith.constant 0 : i32
    return %c0_i32, %c0_i32_0 : i32, i32
  }
  func.func @transform_3(%arg0: i32, %arg1: i32) -> (i32, i32) {
    %c0_i32 = arith.constant 0 : i32
    %c0_i32_0 = arith.constant 0 : i32
    %c0_i32_1 = arith.constant 0 : i32
    return %c0_i32, %c0_i32_0 : i32, i32
  }
  func.func @transform_4(%arg0: i32, %arg1: i32) -> (i32, i32) {
    %c0_i32 = arith.constant 0 : i32
    %c0_i32_0 = arith.constant 0 : i32
    return %arg0, %c0_i32 : i32, i32
  }
}

</mosaic_0001>

<bundles_post_ra>
// kernel: tpu_custom_call.1
= control target key start
LH: loop header
LB: loop body
LE: loop exit
PB: predicated region body
PF: predicated region fallthrough
CT: control target
= control target key end

     0   :  { %s1435_s0 = inlined_call_operand.hbm [shape: bf16[8,1152], index: 0, kind: input, shape index: {}]   ;;  %s1436_s1 = inlined_call_operand.hbm [shape: bf16[1152,128], index: 1, kind: input, shape index: {}]   ;;  %s1437_s2 = inlined_call_operand.hbm [shape: f32[128,128], index: 2, kind: input, shape index: {}]   ;;  %s1438_s3 = inlined_call_operand.vmem [shape: f32[1,128], index: 3, kind: input, shape index: {}]   ;;  %s1439_s4 = inlined_call_operand.hbm [shape: f32[8,128], index: 4, kind: output, shape index: {}]  }
   0x1   :  { %1440 = sst [smem:[#allocation14_spill]] %s1435_s0 }
   0x2   :  { %9 = vsyncpa [#allocation4], 0 }
   0x3   :  { %11 = vsyncpa [#allocation4 + $0x1], 0 }
   0x4   :  { %12 = vsyncpa [#allocation7], 0 }
   0x5   :  { %14 = vsyncpa [#allocation7 + $0x1], 0 }
   0x6   :  { %15 = vsyncpa [#allocation5], 0  ;;  %s1250_s15 = smov 0   ;;  %s1252_s16 = smov 0  }
   0x7   :  { %s1254_s17 = smov 0   ;;  %s1256_s18 = smov 0  }
   0x8   :  { %s1258_s19 = smov 0   ;;  %s1260_s20 = smov 0  }
   0x9 LB: > { %s1279_s21 = sadd.s32 4294967295, %s1210_s20   ;;  %p55_p0 = scmp.ne.s32.totalorder %s1194_s16, %s1190_s15  ;;  %s1210_s20 = sphi %s1260_s20, %s21_s20   ;;  %s1206_s19 = sphi %s1258_s19, %s1450_s19   ;;  %s1202_s18 = sphi %s1256_s18, %s1449_s18   ;;  %s1198_s17 = sphi %s1254_s17, %s1448_s17   ;;  %s1194_s16 = sphi %s1252_s16, %s1447_s16   ;;  %s1190_s15 = sphi %s1250_s15, %s1446_s15  }
   0xa   : > { %p56_p1 = scmp.eq.s32.totalorder %s1279_s21, 0  ;;  %p778_p2 = scmp.ge.s32.totalorder %s1210_s20, 1 }
   0xb   : > { %p160_p3 = scmp.lt.s32.totalorder %s1210_s20, 4  ;;  %s1212_s24 = smov [#allocation8]  }
   0xc   : > { %p1287_p4 = por %p56_p1, %p55_p0  ;;  %s172_s25 = sshll.u32 %s1212_s24, 4  ;;  %s173_s25 = int_to_ptr.vmem [resolvable:$true] %s172_s25 }
   0xd   : > { %p1291_p5 = pnand %p778_p2, %p160_p3  ;;  %s30_s27 = sadd.s32 1, %s1206_s19 }
   0xe   : > { %s1053_s28 = scalar_lea.vmem %s173_s25, 2048  ;;  %p1061_p12 = scmp.lt.s32.totalorder %s173_s25, %s173_s25 }
   0xf   : > { %p940_p6 = pneg %p1291_p5  ;;  %p1054_p9 = scmp.ne.s32.totalorder %s173_s25, %s1053_s28 }
  0x10   : > { %p1062_p13 = scmp.lt.s32.totalorder %s1053_s28, %s1053_s28 }
  0x11   : > { %p1299_p7 = pnand %p940_p6, %p56_p1 }
  0x12   : > { %p1063_p0 = por %p1062_p13, %p1061_p12 }
  0x13   : > { %p1044_p8 = pneg %p1299_p7 }
  0x15   : > { %p1056_p10 = pnand %p1054_p9, %p1044_p8 }
  0x17   : > { %p1057_p11 = pneg %p1056_p10 }
  0x19   : > { %p1064_p2 = pnand %p1063_p0, %p1057_p11 }
  0x1b   : > { %1067 = shalt.err (!%p1064_p2)
}
  0x1c   : > { %s1213_s29 = smov 128   ;;  %s1214_s30 = smov 8  }
  0x1d   : > { %943 = dma.hbm_to_vmem [thread:$0]  (!%p1299_p7), %s1437_s2, 2048, %s173_s25, [#allocation7], %s1213_s29, %s1213_s29, %s1214_s30  }
  0x1e   : > { %p31_p3 = scmp.ge.s32.totalorder %s30_s27, 3  ;;  %s42_s7 = sadd.s32 1, %s1198_s17 }
  0x1f   : > { %p49_p6 = scmp.ne.s32.totalorder %s1198_s17, %s1194_s16  ;;  %p50_p8 = scmp.eq.s32.totalorder %s1210_s20, 0 }
  0x20   : > { %s1452_s27 = smov (%p31_p3, %s30_s27), 0  ;;  %p952_p10 = scmp.lt.s32.totalorder %s1210_s20, 3 }
  0x21   : > { %p51_p9 = por %p50_p8, %p49_p6  ;;  %s38_s8 = ssub.s32 %s1206_s19, %s1452_s27 }
  0x22   : > { %s1321_s9 = sand.u32 1, %s1198_s17   ;;  %p40_p11 = scmp.eq.s32.totalorder %s38_s8, 0 }
  0x23   : > { %s924_s10 = smul.u32 12, %s1321_s9  ;;  %p1324_p12 = pnand %p952_p10, %p51_p9 }
  0x24   : > { %s1329_s12 = scalar_select %p40_p11, %s1198_s17, %s42_s7  }
  0x25   : > { %s819_s13 = smul.u32 192, %s1206_s19  ;;  %s193_s14 = scalar_lea.vmem [#allocation3], %s924_s10 }
  0x26   : > { %s203_s15 = sshll.u32 %s193_s14, 4  ;;  %s1445_s0 = sld [smem:[#allocation14_spill]]  ;;  %s204_s15 = int_to_ptr.vmem [resolvable:$true] %s203_s15 }
  0x27   : > { %s190_s28 = scalar_lea.sflag [#allocation4], %s1321_s9  ;;  %p1070_p7 = pneg %p1324_p12 }
  0x28   : > { %s1081_s29 = scalar_lea.vmem %s204_s15, 192  ;;  %s1215_s30 = smov [#allocation3]  }
  0x29   : > { %p1082_p13 = scmp.ne.s32.totalorder %s204_s15, %s1081_s29  ;;  %s1086_s5 = sshll.u32 %s1215_s30, 4  ;;  %s1087_s5 = int_to_ptr.vmem [resolvable:$false] %s1086_s5 }
  0x2a   : > { %s1088_s6 = scalar_lea.vmem %s1087_s5, 384  ;;  %p1089_p3 = scmp.lt.s32.totalorder %s204_s15, %s1087_s5 }
  0x2b   : > { %p1084_p0 = pnand %p1082_p13, %p1070_p7  ;;  %p1090_p6 = scmp.lt.s32.totalorder %s1088_s6, %s1081_s29 }
  0x2c   : > { %s201_s26 = scalar_lea.hbm %s1445_s0, %s819_s13 }
  0x2d   : > { %p1085_p2 = pneg %p1084_p0  ;;  %p1091_p8 = por %p1090_p6, %p1089_p3 }
  0x2f   : > { %p1092_p9 = pnand %p1091_p8, %p1085_p2 }
  0x31   : > { %1095 = shalt.err (!%p1092_p9)
}
  0x32   : > { %947 = dma.hbm_to_vmem [thread:$0]  (!%p1324_p12), %s201_s26, 192, %s204_s15, %s190_s28  }
  0x33   : > { %s925_s7 = smul.u32 192, %s1321_s9  ;;  %s210_s8 = sand.u32 1, %s1210_s20  }
  0x34   : > { %s820_s10 = smul.u32 3072, %s1206_s19  ;;  %s211_s29 = scalar_lea.sflag [#allocation7], %s210_s8 }
  0x35   : > { %s214_s13 = scalar_lea.vmem [#allocation6], %s925_s7  ;;  %s1216_s6 = smov [#allocation6]  }
  0x36   : > { %s221_s14 = sshll.u32 %s214_s13, 4  ;;  %s220_s30 = scalar_lea.hbm %s1436_s1, %s820_s10  ;;  %s222_s14 = int_to_ptr.vmem [resolvable:$true] %s221_s14 }
  0x37   : > { %s1109_s5 = scalar_lea.vmem %s222_s14, 3072  ;;  %s1114_s0 = sshll.u32 %s1216_s6, 4  ;;  %s1115_s0 = int_to_ptr.vmem [resolvable:$false] %s1114_s0 }
  0x38   : > { %p1110_p10 = scmp.ne.s32.totalorder %s222_s14, %s1109_s5  ;;  %s1116_s9 = scalar_lea.vmem %s1115_s0, 6144 }
  0x39   : > { %p1117_p0 = scmp.lt.s32.totalorder %s222_s14, %s1115_s0  ;;  %p1118_p2 = scmp.lt.s32.totalorder %s1116_s9, %s1109_s5 }
  0x3a   : > { %p1112_p11 = pnand %p1110_p10, %p1070_p7 }
  0x3b   : > { %p1119_p3 = por %p1118_p2, %p1117_p0 }
  0x3c   : > { %p1113_p13 = pneg %p1112_p11 }
  0x3e   : > { %p1120_p6 = pnand %p1119_p3, %p1113_p13 }
  0x40   : > { %1123 = shalt.err (!%p1120_p6)
}
  0x41   : > { %s1217_s15 = smov 64   ;;  %s1218_s26 = smov 4  }
  0x42   : > { %950 = dma.hbm_to_vmem [thread:$0]  (!%p1324_p12), %s220_s30, 3072, %s222_s14, %s211_s29, %s1217_s15, %s1217_s15, %s1218_s26  }
  0x43   : > { %233 = sbr.rel (%p1291_p5) target bundleno = 568 (0x238), region = 36  ;;  %s235_s28 = sand.u32 (!%p1291_p5), 1, %s1194_s16  }
  0x44   : > { %s926_s7 = smul.u32 (!%p1291_p5), 12, %s235_s28  ;;  %s236_s8 = scalar_lea.sflag (!%p1291_p5), [#allocation4], %s235_s28 }
  0x46   : > { %s1357_s10 = scalar_lea.vmem (!%p1291_p5), [#allocation3], %s926_s7 }
  0x48   : > { %1173 = dma.done.wait (%p1287_p4), %s236_s8, 192  }
  0x49   : > { %1175 = vsyncadd (%p1287_p4), %s236_s8, 4294967104  ;;  %s244_s0 = sand.u32 1, %s1279_s21   ;;  %s927_s11 = smul.u32 192, %s235_s28 }
  0x4a   : > { %s245_s13 = scalar_lea.sflag [#allocation7], %s244_s0 }
  0x4b   : > { %s1364_s14 = scalar_lea.vmem [#allocation6], %s927_s11 }
  0x4c   : > { %1177 = dma.done.wait (%p1287_p4), %s245_s13, 3072  }
  0x4d   : > { %1179 = vsyncadd (%p1287_p4), %s245_s13, 4294964224 }
  0x4e   : > { %1181 = dma.done.wait (%p56_p1), [#allocation7], 2048  }
  0x4f   : > { %1183 = vsyncadd (%p56_p1), [#allocation7], 4294965248  ;;  %p785_p5 = scmp.ne.s32.totalorder %s1202_s18, 0 }
  0x51   : > { %283 = sbr.rel (%p785_p5) target bundleno = 88 (0x58), region = 52 }
  0x56   : > { %v1219_v0 = vmov 0.0  }
  0x57   : > { %284 = vst [vmem:[#allocation2] sm:$0xff] %v1219_v0 }
  0x58 PF: > { %v1015_v1 = vld [vmem:[%s1364_s14 + $0x78] sm:$0xff]   ;;  %v1220_v2 = vmov 0.0   ;;  %vm1221_vm0 = vmmov 0   ;;  %v1018_v5 = vld [vmem:[%s1364_s14 + $0x70] sm:$0xff]   ;;  %v1021_v8 = vld [vmem:[%s1364_s14 + $0x68] sm:$0xff]   ;;  %p813_p1 = scmp.ne.s32.totalorder %s1202_s18, 2 }
  0x59   : > { %869 = vmatprep.subr.bf16.mxu1 %v1220_v2  ;;  %v1016_v3 = vld [vmem:[%s1364_s14 + $0xb8] sm:$0xff]   ;;  %821 = vmatprep.subr.bf16.mxu0 %v1015_v1  ;;  %v1019_v6 = vld [vmem:[%s1364_s14 + $0xb0] sm:$0xff]   ;;  %v1022_v9 = vld [vmem:[%s1364_s14 + $0xa8] sm:$0xff]  }
  0x5a   : > { %v1017_v4 = vld [vmem:[%s1364_s14 + $0x38] sm:$0xff]   ;;  %885 = vmatprep.mubr.msk.bf16.mxu1 %vm1221_vm0, %v1220_v2  ;;  %870 = vmatpush3.bf16.msra.mxu1 %v1016_v3  ;;  %v1020_v7 = vld [vmem:[%s1364_s14 + $0x30] sm:$0xff]   ;;  %v1023_v10 = vld [vmem:[%s1364_s14 + $0x28] sm:$0xff]  }
  0x5b   : > { %822 = vmatpush3.bf16.msra.mxu0 %v1017_v4  ;;  %871 = vmatprep.subr.bf16.mxu1 %v1220_v2  ;;  %v1024_v11 = vld [vmem:[%s1364_s14 + $0x60] sm:$0xff]   ;;  %v1027_v14 = vld [vmem:[%s1364_s14 + $0x58] sm:$0xff]   ;;  %v1030_v17 = vld [vmem:[%s1364_s14 + $0x50] sm:$0xff]  }
  0x5c   : > { %823 = vmatprep.subr.bf16.mxu0 %v1018_v5  ;;  %v1025_v12 = vld [vmem:[%s1364_s14 + $0xa0] sm:$0xff]   ;;  %v1028_v15 = vld [vmem:[%s1364_s14 + $0x98] sm:$0xff]   ;;  %v1031_v18 = vld [vmem:[%s1364_s14 + $0x90] sm:$0xff]  }
  0x5d   : > { %v1026_v13 = vld [vmem:[%s1364_s14 + $0x20] sm:$0xff]   ;;  %v1029_v16 = vld [vmem:[%s1364_s14 + $0x18] sm:$0xff]   ;;  %v1032_v19 = vld [vmem:[%s1364_s14 + $0x10] sm:$0xff]  }
  0x5e   : > { %872 = vmatpush3.bf16.msra.mxu1 %v1019_v6  ;;  %v1033_v20 = vld [vmem:[%s1364_s14 + $0x48] sm:$0xff]   ;;  %v1036_v24 = vld [vmem:[%s1364_s14 + $0x40] sm:$0xff]   ;;  %v1041_v28 = vld [vmem:[%s1357_s10 + $0x8] ss:$0 sps:$4 sm:$0xff]  }
  0x5f   : > { %824 = vmatpush3.bf16.msra.mxu0 %v1020_v7  ;;  %873 = vmatprep.subr.bf16.mxu1 %v1220_v2  ;;  %v1034_v21 = vld [vmem:[%s1364_s14 + $0x88] sm:$0xff]   ;;  %v1037_v26 = vld [vmem:[%s1364_s14 + $0x80] sm:$0xff]  }
  0x60   : > { %825 = vmatprep.subr.bf16.mxu0 %v1021_v8  ;;  %v1035_v22 = vld [vmem:[%s1364_s14 + $0x8] sm:$0xff]   ;;  %v1038_v27 = vld [vmem:[%s1364_s14] sm:$0xff]  }
  0x61   : > { %v286_v23 = vld [vmem:[%s1357_s10] sm:$0xff]  ;;  %v285_v36 = vld [vmem:[#allocation2] sm:$0xff] }
  0x62   : > { %874 = vmatpush3.bf16.msra.mxu1 %v1022_v9  ;;  %v787_v25 = vcombine.high %v286_v23, %v286_v23  ;;  %v786_v29 = vcombine.low %v286_v23, %v286_v23 }
  0x63   : > { %826 = vmatpush3.bf16.msra.mxu0 %v1023_v10  ;;  %875 = vmatprep.subr.bf16.mxu1 %v1220_v2 }
  0x64   : > { %827 = vmatprep.subr.bf16.mxu0 %v1024_v11  ;;  %523 = vmatprep.mubr.bf16.mxu0 %v787_v25 }
  0x66   : > { %876 = vmatpush3.bf16.msra.mxu1 %v1025_v12 }
  0x67   : > { %828 = vmatpush3.bf16.msra.mxu0 %v1026_v13  ;;  %877 = vmatprep.subr.bf16.mxu1 %v1220_v2 }
  0x68   : > { %829 = vmatprep.subr.bf16.mxu0 %v1027_v14 }
  0x6a   : > { %878 = vmatpush3.bf16.msra.mxu1 %v1028_v15 }
  0x6b   : > { %830 = vmatpush3.bf16.msra.mxu0 %v1029_v16  ;;  %879 = vmatprep.subr.bf16.mxu1 %v1220_v2 }
  0x6c   : > { %831 = vmatprep.subr.bf16.mxu0 %v1030_v17 }
  0x6e   : > { %880 = vmatpush3.bf16.msra.mxu1 %v1031_v18 }
  0x6f   : > { %832 = vmatpush3.bf16.msra.mxu0 %v1032_v19  ;;  %881 = vmatprep.subr.bf16.mxu1 %v1220_v2 }
  0x70   : > { %833 = vmatprep.subr.bf16.mxu0 %v1033_v20 }
  0x72   : > { %882 = vmatpush3.bf16.msra.mxu1 %v1034_v21 }
  0x73   : > { %834 = vmatpush3.bf16.msra.mxu0 %v1035_v22  ;;  %883 = vmatprep.subr.bf16.mxu1 %v1220_v2 }
  0x74   : > { %835 = vmatprep.subr.bf16.mxu0 %v1036_v24 }
  0x76   : > { %884 = vmatpush3.bf16.msra.mxu1 %v1037_v26 }
  0x77   : > { %836 = vmatpush3.bf16.msra.mxu0 %v1038_v27 }
  0x79   : > { %886 = vmatmul.mubr.bf16.vlgmr.msra.gmra.mxu1 %v1041_v28 }
  0x7a   : > { %524 = vmatmul.mubr.bf16.vlgmr.msra.gmra.mxu0 %v786_v29 }
 0x139   : > { %v565_v30 = vpop.f32.mrf.mxu1 }
 0x13a   : > { %v837_v31 = vpop.f32.mrf.mxu0 }
 0x13b   : > { %v887_v32 = vpop.f32.mrf.mxu1 }
 0x13c   : > { %v838_v33 = vpop.f32.mrf.mxu0 }
 0x13d   : > { %v839_v34 = vadd.f32 %v838_v33, %v837_v31  ;;  %v568_v35 = vpop.f32.mrf.mxu1 }
 0x13e   : > { %v840_v37 = vpop.f32.mrf.mxu0 }
 0x13f   : > { %v566_v38 = vadd.f32 %v839_v34, %v565_v30  ;;  %v888_v39 = vpop.f32.mrf.mxu1  ;;  %576 = sbr.rel (%p813_p1) target bundleno = 553 (0x229), region = 56 }
 0x140   : > { %v841_v40 = vpop.f32.mrf.mxu0 }
 0x141   : > { %v571_v41 = vadd.f32 %v566_v38, %v285_v36 }
 0x143   : > { %572 = vst [vmem:[#allocation2] sm:$0xff] %v571_v41 }
 0x144   : > { %v593_v42 = vld [vmem:[#allocation8 + $0x78] sm:$0xff]  ;;  %v1222_v43 = vmov 0.0   ;;  %v592_v44 = vld [vmem:[#allocation8 + $0x70] sm:$0xff]  ;;  %vm1223_vm1 = vmmov 0   ;;  %v591_v45 = vld [vmem:[#allocation8 + $0x68] sm:$0xff] }
 0x145   : > { %889 = vmatprep.subr.mxu0 %v1222_v43  ;;  %921 = vmatprep.mubr.msk.f32.mxu0 %vm1223_vm1, %v1222_v43  ;;  %v590_v46 = vld [vmem:[#allocation8 + $0x60] sm:$0xff]  ;;  %v589_v47 = vld [vmem:[#allocation8 + $0x58] sm:$0xff]  ;;  %v588_v48 = vld [vmem:[#allocation8 + $0x50] sm:$0xff] }
 0x146   : > { %890 = vmatpush3.msra.mxu0 %v593_v42  ;;  %v587_v49 = vld [vmem:[#allocation8 + $0x48] sm:$0xff]  ;;  %v586_v50 = vld [vmem:[#allocation8 + $0x40] sm:$0xff]  ;;  %v585_v51 = vld [vmem:[#allocation8 + $0x38] sm:$0xff] }
 0x147   : > { %891 = vmatprep.subr.mxu0 %v1222_v43  ;;  %v584_v52 = vld [vmem:[#allocation8 + $0x30] sm:$0xff]  ;;  %v583_v53 = vld [vmem:[#allocation8 + $0x28] sm:$0xff]  ;;  %v582_v54 = vld [vmem:[#allocation8 + $0x20] sm:$0xff] }
 0x148   : > { %892 = vmatpush3.msra.mxu0 %v592_v44  ;;  %v581_v55 = vld [vmem:[#allocation8 + $0x18] sm:$0xff]  ;;  %v580_v56 = vld [vmem:[#allocation8 + $0x10] sm:$0xff]  ;;  %v579_v57 = vld [vmem:[#allocation8 + $0x8] sm:$0xff] }
 0x149   : > { %893 = vmatprep.subr.mxu0 %v1222_v43  ;;  %v578_v58 = vld [vmem:[#allocation8] sm:$0xff] }
 0x14a   : > { %894 = vmatpush3.msra.mxu0 %v591_v45  ;;  %v577_v59 = vld [vmem:[#allocation2] sm:$0xff] }
 0x14b   : > { %895 = vmatprep.subr.mxu0 %v1222_v43  ;;  %v814_v60 = vld [vmem:[%s1438_s3] ss:$0 sm:$0xff] }
 0x14c   : > { %896 = vmatpush3.msra.mxu0 %v590_v46 }
 0x14d   : > { %897 = vmatprep.subr.mxu0 %v1222_v43 }
 0x14e   : > { %898 = vmatpush3.msra.mxu0 %v589_v47 }
 0x14f   : > { %899 = vmatprep.subr.mxu0 %v1222_v43 }
 0x150   : > { %900 = vmatpush3.msra.mxu0 %v588_v48 }
 0x151   : > { %901 = vmatprep.subr.mxu0 %v1222_v43 }
 0x152   : > { %902 = vmatpush3.msra.mxu0 %v587_v49 }
 0x153   : > { %903 = vmatprep.subr.mxu0 %v1222_v43 }
 0x154   : > { %904 = vmatpush3.msra.mxu0 %v586_v50 }
 0x155   : > { %905 = vmatprep.subr.mxu0 %v1222_v43 }
 0x156   : > { %906 = vmatpush3.msra.mxu0 %v585_v51 }
 0x157   : > { %907 = vmatprep.subr.mxu0 %v1222_v43 }
 0x158   : > { %908 = vmatpush3.msra.mxu0 %v584_v52 }
 0x159   : > { %909 = vmatprep.subr.mxu0 %v1222_v43 }
 0x15a   : > { %910 = vmatpush3.msra.mxu0 %v583_v53 }
 0x15b   : > { %911 = vmatprep.subr.mxu0 %v1222_v43 }
 0x15c   : > { %912 = vmatpush3.msra.mxu0 %v582_v54 }
 0x15d   : > { %913 = vmatprep.subr.mxu0 %v1222_v43 }
 0x15e   : > { %914 = vmatpush3.msra.mxu0 %v581_v55 }
 0x15f   : > { %915 = vmatprep.subr.mxu0 %v1222_v43 }
 0x160   : > { %916 = vmatpush3.msra.mxu0 %v580_v56 }
 0x161   : > { %917 = vmatprep.subr.mxu0 %v1222_v43 }
 0x162   : > { %918 = vmatpush3.msra.mxu0 %v579_v57 }
 0x163   : > { %919 = vmatprep.subr.mxu0 %v1222_v43 }
 0x164   : > { %920 = vmatpush3.msra.mxu0 %v578_v58 }
 0x165   : > { %922 = vmatmul.mubr.f32.vlgmr.msra.gmra.mxu0 %v577_v59 }
 0x225   : > { %v667_v61 = vpop.f32.mrf.mxu0 }
 0x226   : > { %v668_v62 = vadd.f32 %v814_v60, %v667_v61 }
 0x227   : > { %v923_v63 = vpop.f32.mrf.mxu0 }
 0x228   : > { %671 = vst [vmem:[#allocation9] sm:$0xff] %v668_v62 }
 0x229 PF: > { %p954_p4 = scmp.eq.s32.totalorder %s1279_s21, 2  ;;  %s1224_s23 = smov [#allocation9]  }
 0x22a   : > { %s681_s24 = sshll.u32 %s1224_s23, 4  ;;  %s682_s24 = int_to_ptr.vmem [resolvable:$true] %s681_s24 }
 0x22b   : > { %s1124_s25 = scalar_lea.vmem %s682_s24, 128  ;;  %p1131_p9 = scmp.lt.s32.totalorder %s682_s24, %s682_s24 }
 0x22c   : > { %p1125_p12 = scmp.ne.s32.totalorder %s682_s24, %s1124_s25  ;;  %p1132_p10 = scmp.lt.s32.totalorder %s1124_s25, %s1124_s25 }
 0x22e   : > { %p1126_p7 = pnand %p1125_p12, %p954_p4  ;;  %p1133_p11 = por %p1132_p10, %p1131_p9 }
 0x230   : > { %p1127_p8 = pneg %p1126_p7 }
 0x232   : > { %p1134_p13 = pnand %p1133_p11, %p1127_p8 }
 0x234   : > { %1137 = shalt.err (!%p1134_p13)
}
 0x235   : > { %937 = dma.vmem_to_hbm [thread:$0]  (%p954_p4), %s682_s24, 128, %s1439_s4, [#allocation5]  }
 0x236   : > { %1185 = dma.done.wait (%p954_p4), [#allocation5], 128  }
 0x237   : > { %1187 = vsyncadd (%p954_p4), [#allocation5], 4294967168 }
 0x238 PF: > { %s21_s20 = sadd.s32 1, %s1210_s20   ;;  %s1446_s15 = smov %s1194_s16 }
 0x239   : > { %p18_p0 = scmp.ge.s32.totalorder %s21_s20, 5   ;;  %s1447_s16 = smov %s1198_s17 }
 0x23a   : > { %s1448_s17 = smov %s1329_s12  ;;  %s1449_s18 = smov %s1206_s19 }
 0x23b   : > { %s1450_s19 = smov %s1452_s27  ;;  %20 = sbr.rel (!%p18_p0) target bundleno = 9 (0x9), region = 99 }
 0x240   :  { %694 = vsyncpa [#allocation4], 1 }
 0x241   :  { %696 = vsyncpa [#allocation4 + $0x1], 1 }
 0x242   :  { %697 = vsyncpa [#allocation7], 1 }
 0x243   :  { %699 = vsyncpa [#allocation7 + $0x1], 1 }
 0x244   :  { %700 = vsyncpa [#allocation5], 1 }
 0x245   :  { %702 = vsyncpa [#allocation5 + $0x1], 1 }

</bundles_post_ra>
